<compile_context>
chip_gen: v6e
topology: v6e:2x2x1
jax: 0.10.0
libtpu: 0.0.40
codegen_flags: <defaults>
</compile_context>

<pallas_src>
import jax
import jax.numpy as jnp
from jax.experimental import pallas as pl
from jax.experimental.pallas import tpu as pltpu

LANE = 128  # TPU lane width; pad feature dims to multiples of this.


def _round_up(x, m):
    return (x + m - 1) // m * m


def lstm_decoder_kernel(xh_ref, c_ref, w_cell_ref, b_cell_ref,
                        w_out_ref, b_out_ref,
                        logits_ref, h_out_ref, c_out_ref,
                        h_bf16):
    """Grid axis 0 tiles the (padded) vocab dim of the output projection.

    The LSTM cell itself runs once, at the first grid step; its result stays
    resident in VMEM for all vocab tiles (constant-index_map outputs + a bf16
    scratch copy of h' used as the projection LHS).
    """
    j = pl.program_id(0)

    @pl.when(j == 0)
    def _():
        # Fused gate matmul: one MXU pass, bf16 operands, f32 accumulation.
        xh = xh_ref[...].astype(jnp.bfloat16)            # [B, E+S+Hp]
        gates = jnp.dot(xh, w_cell_ref[...],
                        preferred_element_type=jnp.float32) + b_cell_ref[...]
        hp = c_ref.shape[-1]                             # padded H (x128)
        i_g = jax.nn.sigmoid(gates[:, 0 * hp:1 * hp])    # lane-aligned slices
        f_g = jax.nn.sigmoid(gates[:, 1 * hp:2 * hp])
        g_g = jnp.tanh(gates[:, 2 * hp:3 * hp])
        o_g = jax.nn.sigmoid(gates[:, 3 * hp:4 * hp])
        c_new = f_g * c_ref[...] + i_g * g_g
        h_new = o_g * jnp.tanh(c_new)
        h_out_ref[...] = h_new
        c_out_ref[...] = c_new
        h_bf16[...] = h_new.astype(jnp.bfloat16)

    # Output projection for this vocab tile: [B, Hp] @ [Hp, TN] + b.
    logits_ref[...] = (
        jnp.dot(h_bf16[...], w_out_ref[...],
                preferred_element_type=jnp.float32) + b_out_ref[...])


def make_params(key, vocab_size, embedding_size, encoder_state_size,
                hidden_size, pad_idx=0):
    """Logical (PyTorch-shaped, transposed) f32 parameters."""
    ks = jax.random.split(key, 7)
    in_size = embedding_size + encoder_state_size
    s = 1.0 / float(hidden_size) ** 0.5

    emb = jax.random.normal(ks[0], (vocab_size, embedding_size), jnp.float32)
    emb = emb.at[pad_idx].set(0.0)                 # padding_idx row is zero

    # PyTorch LSTMCell weights are [4H, in] / [4H, H]; stored transposed here.
    w_ih_t = jax.random.uniform(ks[1], (in_size, 4 * hidden_size),
                                jnp.float32, -s, s)
    w_hh_t = jax.random.uniform(ks[2], (hidden_size, 4 * hidden_size),
                                jnp.float32, -s, s)
    b_ih = jax.random.uniform(ks[3], (4 * hidden_size,), jnp.float32, -s, s)
    b_hh = jax.random.uniform(ks[4], (4 * hidden_size,), jnp.float32, -s, s)

    # output Linear: PyTorch weight is [V, H]; stored transposed.
    w_out_t = jax.random.uniform(ks[5], (hidden_size, vocab_size),
                                 jnp.float32, -s, s)
    b_out = jax.random.uniform(ks[6], (vocab_size,), jnp.float32, -s, s)

    return dict(embedding=emb, w_ih_t=w_ih_t, w_hh_t=w_hh_t,
                b_ih=b_ih, b_hh=b_hh, w_out_t=w_out_t, b_out=b_out)


def prepare_kernel_params(params, *, vocab_tile=2048):
    """Pack logical params into the kernel layout (done ONCE per model):
    fused+gate-padded bf16 cell weight, lane-padded bf16 output weight."""
    emb = params["embedding"]
    w_ih_t, w_hh_t = params["w_ih_t"], params["w_hh_t"]
    es = w_ih_t.shape[0]                 # E + S
    h = w_hh_t.shape[0]
    v = params["w_out_t"].shape[1]

    hp = _round_up(h, LANE)
    # Vocab tile: lane multiple, capped (re-derive cap per chip VMEM budget).
    tn = min(_round_up(v, LANE), _round_up(vocab_tile, LANE))
    vp = _round_up(_round_up(v, LANE), tn)
    k = es + hp

    # Fused cell weight: rows = [x | h_pad], cols = [i|f|g|o], each gate padded
    # to Hp so in-kernel gate slices are lane-aligned.  Padded rows/cols are 0.
    w_cell = jnp.zeros((k, 4 * hp), jnp.float32)
    b_cell = jnp.zeros((4 * hp,), jnp.float32)
    b_fused = params["b_ih"] + params["b_hh"]
    for g in range(4):
        w_cell = w_cell.at[:es, g * hp:g * hp + h].set(w_ih_t[:, g * h:(g + 1) * h])
        w_cell = w_cell.at[es:es + h, g * hp:g * hp + h].set(w_hh_t[:, g * h:(g + 1) * h])
        b_cell = b_cell.at[g * hp:g * hp + h].set(b_fused[g * h:(g + 1) * h])

    w_out = jnp.zeros((hp, vp), jnp.float32).at[:h, :v].set(params["w_out_t"])
    b_out = jnp.zeros((vp,), jnp.float32).at[:v].set(params["b_out"])

    return dict(
        embedding=emb,
        w_cell=w_cell.astype(jnp.bfloat16),      # bf16 weights, f32 accumulate
        b_cell=b_cell.reshape(1, 4 * hp),
        w_out=w_out.astype(jnp.bfloat16),
        b_out=b_out.reshape(1, vp),
        dims=dict(ES=es, H=h, Hp=hp, V=v, Vp=vp, TN=tn, K=k),
    )


def lstm_decoder_step(inputs, encoder_state, hidden_state, kparams):
    """One decode step.  inputs: [B] int32 tokens, encoder_state: [B, S],
    hidden_state: (h, c) each [B, H] (num_layers=1)."""
    d = kparams["dims"]
    H, Hp, V, Vp, TN, K = d["H"], d["Hp"], d["V"], d["Vp"], d["TN"], d["K"]
    h, c = hidden_state
    B = inputs.shape[0]

    # --- glue: embedding gather + concat + padding (plain JAX) ---
    emb = jnp.take(kparams["embedding"], inputs, axis=0)        # [B, E]
    h_pad = jnp.pad(h, ((0, 0), (0, Hp - H)))
    c_pad = jnp.pad(c, ((0, 0), (0, Hp - H)))
    xh = jnp.concatenate([emb, encoder_state, h_pad], axis=-1)  # [B, K]

    const = lambda j: (0, 0)
    logits_p, h_new_p, c_new_p = pl.pallas_call(
        lstm_decoder_kernel,
        out_shape=(jax.ShapeDtypeStruct((B, Vp), jnp.float32),
                   jax.ShapeDtypeStruct((B, Hp), jnp.float32),
                   jax.ShapeDtypeStruct((B, Hp), jnp.float32)),
        grid=(Vp // TN,),
        in_specs=[
            pl.BlockSpec((B, K), const),                 # xh
            pl.BlockSpec((B, Hp), const),                # c
            pl.BlockSpec((K, 4 * Hp), const),            # fused cell weight
            pl.BlockSpec((1, 4 * Hp), const),            # fused cell bias
            pl.BlockSpec((Hp, TN), lambda j: (0, j)),    # w_out vocab tile
            pl.BlockSpec((1, TN), lambda j: (0, j)),     # b_out vocab tile
        ],
        out_specs=(
            pl.BlockSpec((B, TN), lambda j: (0, j)),     # logits vocab tile
            pl.BlockSpec((B, Hp), const),                # h'  (resident)
            pl.BlockSpec((B, Hp), const),                # c'  (resident)
        ),
        scratch_shapes=[pltpu.VMEM((B, Hp), jnp.bfloat16)],
        compiler_params=pltpu.CompilerParams(
            # Vocab axis carries the resident h'/c'/scratch dependence.
            dimension_semantics=("arbitrary",)),
    )(xh, c_pad, kparams["w_cell"], kparams["b_cell"],
      kparams["w_out"], kparams["b_out"])

    return logits_p[:, :V], (h_new_p[:, :H], c_new_p[:, :H])


def lstm_decoder_step_ref(inputs, encoder_state, hidden_state, params):
    """Pure-JAX reference mirroring the kernel math (bf16 weights/operands,
    f32 accumulation) on the unpadded logical shapes."""
    h, c = hidden_state
    emb = jnp.take(params["embedding"], inputs, axis=0)
    xh = jnp.concatenate([emb, encoder_state, h], axis=-1).astype(jnp.bfloat16)
    w_cell = jnp.concatenate([params["w_ih_t"], params["w_hh_t"]],
                             axis=0).astype(jnp.bfloat16)
    b = (params["b_ih"] + params["b_hh"])[None, :]
    gates = jnp.dot(xh, w_cell, preferred_element_type=jnp.float32) + b
    H = h.shape[-1]
    i = jax.nn.sigmoid(gates[:, 0 * H:1 * H])
    f = jax.nn.sigmoid(gates[:, 1 * H:2 * H])
    g = jnp.tanh(gates[:, 2 * H:3 * H])
    o = jax.nn.sigmoid(gates[:, 3 * H:4 * H])
    c_new = f * c + i * g
    h_new = o * jnp.tanh(c_new)
    logits = (jnp.dot(h_new.astype(jnp.bfloat16),
                      params["w_out_t"].astype(jnp.bfloat16),
                      preferred_element_type=jnp.float32)
              + params["b_out"][None, :])
    return logits, (h_new, c_new)


if __name__ == "__main__":
    # Small, module-consistent shapes.
    vocab_size = 32
    embedding_size = 16
    encoder_state_size = 16
    hidden_size = 32
    batch = 8
    pad_idx = 0

    key = jax.random.PRNGKey(0)
    k_par, k_in, k_enc, k_h, k_c = jax.random.split(key, 5)

    params = make_params(k_par, vocab_size, embedding_size,
                         encoder_state_size, hidden_size, pad_idx)
    kparams = prepare_kernel_params(params)

    inputs = jax.random.randint(k_in, (batch,), 0, vocab_size, jnp.int32)
    encoder_state = jax.random.normal(k_enc, (batch, encoder_state_size),
                                      jnp.float32)
    h0 = jax.random.normal(k_h, (batch, hidden_size), jnp.float32)
    c0 = jax.random.normal(k_c, (batch, hidden_size), jnp.float32)

    logits, (h1, c1) = lstm_decoder_step(inputs, encoder_state, (h0, c0),
                                         kparams)
    jax.block_until_ready((logits, h1, c1))

    # Verify against the pure-JAX reference (same bf16 weight quantization).
    ref_logits, (ref_h1, ref_c1) = lstm_decoder_step_ref(
        inputs, encoder_state, (h0, c0), params)
    assert jnp.allclose(logits, ref_logits, atol=2e-3, rtol=2e-3)
    assert jnp.allclose(h1, ref_h1, atol=2e-3, rtol=2e-3)
    assert jnp.allclose(c1, ref_c1, atol=2e-3, rtol=2e-3)

    print("KERNEL_OK")
</pallas_src>

<mosaic_0001>
module attributes {stable_mosaic.version = 11 : i64} {
  func.func @lstm_decoder_kernel(%arg0: i32, %arg1: memref<8x160xf32, #tpu.memory_space<vmem>>, %arg2: memref<8x128xf32, #tpu.memory_space<vmem>>, %arg3: memref<160x512xbf16, #tpu.memory_space<vmem>>, %arg4: memref<1x512xf32, #tpu.memory_space<vmem>>, %arg5: memref<128x128xbf16, #tpu.memory_space<vmem>>, %arg6: memref<1x128xf32, #tpu.memory_space<vmem>>, %arg7: memref<8x128xf32, #tpu.memory_space<vmem>>, %arg8: memref<8x128xf32, #tpu.memory_space<vmem>>, %arg9: memref<8x128xf32, #tpu.memory_space<vmem>>, %arg10: memref<8x128xbf16, #tpu.memory_space<vmem>>) attributes {dimension_semantics = [#tpu.dimension_semantics<arbitrary>], iteration_bounds = array<i64: 1>, scalar_prefetch = 0 : i64, scratch_operands = 1 : i64, tpu.core_type = #tpu.core_type<tc>, window_params = [{pipeline_mode = #tpu.pipeline_mode<synchronous>, transform_indices = @transform_0, window_bounds = array<i64: 8, 160>}, {pipeline_mode = #tpu.pipeline_mode<synchronous>, transform_indices = @transform_1, window_bounds = array<i64: 8, 128>}, {pipeline_mode = #tpu.pipeline_mode<synchronous>, transform_indices = @transform_2, window_bounds = array<i64: 160, 512>}, {pipeline_mode = #tpu.pipeline_mode<synchronous>, transform_indices = @transform_3, window_bounds = array<i64: 1, 512>}, {transform_indices = @transform_4, window_bounds = array<i64: 128, 128>}, {transform_indices = @transform_5, window_bounds = array<i64: 1, 128>}, {transform_indices = @transform_6, window_bounds = array<i64: 8, 128>}, {pipeline_mode = #tpu.pipeline_mode<synchronous>, transform_indices = @transform_7, window_bounds = array<i64: 8, 128>}, {pipeline_mode = #tpu.pipeline_mode<synchronous>, transform_indices = @transform_8, window_bounds = array<i64: 8, 128>}]} {
    %c0_i32 = arith.constant 0 : i32
    %0 = arith.cmpi eq, %arg0, %c0_i32 : i32
    %1 = arith.extui %0 : i1 to i32
    %c0_i32_0 = arith.constant 0 : i32
    %2 = arith.cmpi ne, %1, %c0_i32_0 : i32
    scf.if %2 {
      %c0_8 = arith.constant 0 : index
      %c0_9 = arith.constant 0 : index
      %10 = vector.load %arg1[%c0_8, %c0_9] : memref<8x160xf32, #tpu.memory_space<vmem>>, vector<8x160xf32>
      %11 = arith.truncf %10 : vector<8x160xf32> to vector<8x160xbf16>
      %c0_10 = arith.constant 0 : index
      %c0_11 = arith.constant 0 : index
      %12 = vector.load %arg3[%c0_10, %c0_11] : memref<160x512xbf16, #tpu.memory_space<vmem>>, vector<160x512xbf16>
      %cst_12 = arith.constant dense<0.000000e+00> : vector<8x512xf32>
      %13 = tpu.matmul %11, %12, %cst_12 {dimension_numbers = #tpu.dot_dimension_numbers<[1], [0], [0], [1], [0, 0, 1, 1], [], []>} : vector<8x160xbf16>, vector<160x512xbf16>, vector<8x512xf32> -> vector<8x512xf32>
      %c0_13 = arith.constant 0 : index
      %c0_14 = arith.constant 0 : index
      %14 = vector.load %arg4[%c0_13, %c0_14] : memref<1x512xf32, #tpu.memory_space<vmem>>, vector<1x512xf32>
      %15 = vector.broadcast %14 : vector<1x512xf32> to vector<8x512xf32>
      %16 = arith.addf %13, %15 : vector<8x512xf32>
      %17 = vector.extract_strided_slice %16 {offsets = [0, 0], sizes = [8, 128], strides = [1, 1]} : vector<8x512xf32> to vector<8x128xf32>
      %18 = arith.negf %17 : vector<8x128xf32>
      %19 = math.exp %18 : vector<8x128xf32>
      %cst_15 = arith.constant 1.000000e+00 : f32
      %20 = vector.broadcast %cst_15 : f32 to vector<8x128xf32>
      %21 = arith.addf %20, %19 : vector<8x128xf32>
      %22 = arith.divf %20, %21 : vector<8x128xf32>
      %23 = vector.extract_strided_slice %16 {offsets = [0, 128], sizes = [8, 128], strides = [1, 1]} : vector<8x512xf32> to vector<8x128xf32>
      %24 = arith.negf %23 : vector<8x128xf32>
      %25 = math.exp %24 : vector<8x128xf32>
      %cst_16 = arith.constant 1.000000e+00 : f32
      %26 = vector.broadcast %cst_16 : f32 to vector<8x128xf32>
      %27 = arith.addf %26, %25 : vector<8x128xf32>
      %28 = arith.divf %26, %27 : vector<8x128xf32>
      %29 = vector.extract_strided_slice %16 {offsets = [0, 256], sizes = [8, 128], strides = [1, 1]} : vector<8x512xf32> to vector<8x128xf32>
      %30 = math.tanh %29 : vector<8x128xf32>
      %31 = vector.extract_strided_slice %16 {offsets = [0, 384], sizes = [8, 128], strides = [1, 1]} : vector<8x512xf32> to vector<8x128xf32>
      %32 = arith.negf %31 : vector<8x128xf32>
      %33 = math.exp %32 : vector<8x128xf32>
      %cst_17 = arith.constant 1.000000e+00 : f32
      %34 = vector.broadcast %cst_17 : f32 to vector<8x128xf32>
      %35 = arith.addf %34, %33 : vector<8x128xf32>
      %36 = arith.divf %34, %35 : vector<8x128xf32>
      %c0_18 = arith.constant 0 : index
      %c0_19 = arith.constant 0 : index
      %37 = vector.load %arg2[%c0_18, %c0_19] : memref<8x128xf32, #tpu.memory_space<vmem>>, vector<8x128xf32>
      %38 = arith.mulf %28, %37 : vector<8x128xf32>
      %39 = arith.mulf %22, %30 : vector<8x128xf32>
      %40 = arith.addf %38, %39 : vector<8x128xf32>
      %41 = math.tanh %40 : vector<8x128xf32>
      %42 = arith.mulf %36, %41 : vector<8x128xf32>
      %c0_20 = arith.constant 0 : index
      %c0_21 = arith.constant 0 : index
      %43 = vector.load %arg8[%c0_20, %c0_21] : memref<8x128xf32, #tpu.memory_space<vmem>>, vector<8x128xf32>
      tpu.vector_store %arg8[%c0_20, %c0_21], %42 {strides = array<i32>} : memref<8x128xf32, #tpu.memory_space<vmem>>, vector<8x128xf32>,
      %c0_22 = arith.constant 0 : index
      %c0_23 = arith.constant 0 : index
      %44 = vector.load %arg9[%c0_22, %c0_23] : memref<8x128xf32, #tpu.memory_space<vmem>>, vector<8x128xf32>
      tpu.vector_store %arg9[%c0_22, %c0_23], %40 {strides = array<i32>} : memref<8x128xf32, #tpu.memory_space<vmem>>, vector<8x128xf32>,
      %45 = arith.truncf %42 : vector<8x128xf32> to vector<8x128xbf16>
      %c0_24 = arith.constant 0 : index
      %c0_25 = arith.constant 0 : index
      %46 = vector.load %arg10[%c0_24, %c0_25] : memref<8x128xbf16, #tpu.memory_space<vmem>>, vector<8x128xbf16>
      tpu.vector_store %arg10[%c0_24, %c0_25], %45 {strides = array<i32>} : memref<8x128xbf16, #tpu.memory_space<vmem>>, vector<8x128xbf16>,
    } else {
    }
    %c0 = arith.constant 0 : index
    %c0_1 = arith.constant 0 : index
    %3 = vector.load %arg10[%c0, %c0_1] : memref<8x128xbf16, #tpu.memory_space<vmem>>, vector<8x128xbf16>
    %c0_2 = arith.constant 0 : index
    %c0_3 = arith.constant 0 : index
    %4 = vector.load %arg5[%c0_2, %c0_3] : memref<128x128xbf16, #tpu.memory_space<vmem>>, vector<128x128xbf16>
    %cst = arith.constant dense<0.000000e+00> : vector<8x128xf32>
    %5 = tpu.matmul %3, %4, %cst {dimension_numbers = #tpu.dot_dimension_numbers<[1], [0], [0], [1], [0, 0, 1, 1], [], []>} : vector<8x128xbf16>, vector<128x128xbf16>, vector<8x128xf32> -> vector<8x128xf32>
    %c0_4 = arith.constant 0 : index
    %c0_5 = arith.constant 0 : index
    %6 = vector.load %arg6[%c0_4, %c0_5] : memref<1x128xf32, #tpu.memory_space<vmem>>, vector<1x128xf32>
    %7 = vector.broadcast %6 : vector<1x128xf32> to vector<8x128xf32>
    %8 = arith.addf %5, %7 : vector<8x128xf32>
    %c0_6 = arith.constant 0 : index
    %c0_7 = arith.constant 0 : index
    %9 = vector.load %arg7[%c0_6, %c0_7] : memref<8x128xf32, #tpu.memory_space<vmem>>, vector<8x128xf32>
    tpu.vector_store %arg7[%c0_6, %c0_7], %8 {strides = array<i32>} : memref<8x128xf32, #tpu.memory_space<vmem>>, vector<8x128xf32>,
    return
  }
  func.func @transform_0(%arg0: i32) -> (i32, i32) {
    %c0_i32 = arith.constant 0 : i32
    %c0_i32_0 = arith.constant 0 : i32
    %c0_i32_1 = arith.constant 0 : i32
    return %c0_i32, %c0_i32_0 : i32, i32
  }
  func.func @transform_1(%arg0: i32) -> (i32, i32) {
    %c0_i32 = arith.constant 0 : i32
    %c0_i32_0 = arith.constant 0 : i32
    %c0_i32_1 = arith.constant 0 : i32
    return %c0_i32, %c0_i32_0 : i32, i32
  }
  func.func @transform_2(%arg0: i32) -> (i32, i32) {
    %c0_i32 = arith.constant 0 : i32
    %c0_i32_0 = arith.constant 0 : i32
    %c0_i32_1 = arith.constant 0 : i32
    return %c0_i32, %c0_i32_0 : i32, i32
  }
  func.func @transform_3(%arg0: i32) -> (i32, i32) {
    %c0_i32 = arith.constant 0 : i32
    %c0_i32_0 = arith.constant 0 : i32
    %c0_i32_1 = arith.constant 0 : i32
    return %c0_i32, %c0_i32_0 : i32, i32
  }
  func.func @transform_4(%arg0: i32) -> (i32, i32) {
    %c0_i32 = arith.constant 0 : i32
    %c0_i32_0 = arith.constant 0 : i32
    return %c0_i32, %arg0 : i32, i32
  }
  func.func @transform_5(%arg0: i32) -> (i32, i32) {
    %c0_i32 = arith.constant 0 : i32
    %c0_i32_0 = arith.constant 0 : i32
    return %c0_i32, %arg0 : i32, i32
  }
  func.func @transform_6(%arg0: i32) -> (i32, i32) {
    %c0_i32 = arith.constant 0 : i32
    %c0_i32_0 = arith.constant 0 : i32
    return %c0_i32, %arg0 : i32, i32
  }
  func.func @transform_7(%arg0: i32) -> (i32, i32) {
    %c0_i32 = arith.constant 0 : i32
    %c0_i32_0 = arith.constant 0 : i32
    %c0_i32_1 = arith.constant 0 : i32
    return %c0_i32, %c0_i32_0 : i32, i32
  }
  func.func @transform_8(%arg0: i32) -> (i32, i32) {
    %c0_i32 = arith.constant 0 : i32
    %c0_i32_0 = arith.constant 0 : i32
    %c0_i32_1 = arith.constant 0 : i32
    return %c0_i32, %c0_i32_0 : i32, i32
  }
}

</mosaic_0001>

<bundles_post_ra>
// kernel: tpu_custom_call.1
= control target key start
LH: loop header
LB: loop body
LE: loop exit
PB: predicated region body
PF: predicated region fallthrough
CT: control target
= control target key end

     0   :  { %14 = vsyncpa [#allocation4], 0  ;;  %s1037_s0 = inlined_call_operand.hbm [shape: f32[8,160], index: 0, kind: input, shape index: {}]   ;;  %s1038_s1 = inlined_call_operand.hbm [shape: f32[8,128], index: 1, kind: input, shape index: {}]   ;;  %s1039_s2 = inlined_call_operand.hbm [shape: bf16[160,512], index: 2, kind: input, shape index: {}]   ;;  %s1040_s3 = inlined_call_operand.vmem [shape: f32[1,512], index: 3, kind: input, shape index: {}]   ;;  %s1041_s4 = inlined_call_operand.hbm [shape: bf16[128,128], index: 4, kind: input, shape index: {}]   ;;  %s1042_s5 = inlined_call_operand.vmem [shape: f32[1,128], index: 5, kind: input, shape index: {}]   ;;  %s1043_s6 = inlined_call_operand.hbm [shape: f32[8,128], index: 6, kind: output, shape index: {0}]   ;;  %s1044_s7 = inlined_call_operand.hbm [shape: f32[8,128], index: 7, kind: output, shape index: {1}]   ;;  %s1045_s8 = inlined_call_operand.hbm [shape: f32[8,128], index: 8, kind: output, shape index: {2}]  }
   0x1   :  { %15 = vsyncpa [#allocation7], 0 }
   0x2   :  { %16 = vsyncpa [#allocation10], 0 }
   0x3   :  { %17 = vsyncpa [#allocation5], 0 }
   0x4   :  { %18 = vsyncpa [#allocation13], 0  ;;  %s952_s27 = smov [#allocation6]   ;;  %s953_s29 = smov [#allocation3]  }
   0x5   :  { %s35_s28 = sshll.u32 %s952_s27, 4  ;;  %s25_s30 = sshll.u32 %s953_s29, 4  ;;  %s36_s28 = int_to_ptr.vmem [resolvable:$true] %s35_s28  ;;  %s26_s30 = int_to_ptr.vmem [resolvable:$true] %s25_s30 }
   0x6   :  { %s810_s9 = scalar_lea.vmem %s36_s28, 128  ;;  %p815_p1 = scmp.lt.s32.totalorder %s36_s28, %s36_s28 }
   0x7   :  { %p811_p0 = scmp.ne.s32.totalorder %s36_s28, %s810_s9  ;;  %p816_p2 = scmp.lt.s32.totalorder %s810_s9, %s810_s9 }
   0x9   :  { %p817_p3 = por %p816_p2, %p815_p1 }
   0xb   :  { %p818_p4 = pnand %p817_p3, %p811_p0 }
   0xd   :  { %821 = shalt.err (!%p818_p4)
}
   0xe   :  { %38 = dma.hbm_to_vmem [thread:$0]  %s1038_s1, 128, %s36_s28, [#allocation7]  }
   0xf   :  { %s830_s12 = scalar_lea.vmem %s26_s30, 256  ;;  %p835_p6 = scmp.lt.s32.totalorder %s26_s30, %s26_s30 }
  0x10   :  { %p831_p5 = scmp.ne.s32.totalorder %s26_s30, %s830_s12  ;;  %p836_p7 = scmp.lt.s32.totalorder %s830_s12, %s830_s12 }
  0x12   :  { %p837_p8 = por %p836_p7, %p835_p6 }
  0x14   :  { %p838_p9 = pnand %p837_p8, %p831_p5 }
  0x16   :  { %841 = shalt.err (!%p838_p9)
}
  0x17   :  { %28 = dma.hbm_to_vmem [thread:$0]  %s1037_s0, 256, %s26_s30, [#allocation4]  }
  0x18   :  { %s954_s15 = smov [#allocation8]  }
  0x19   :  { %s44_s16 = sshll.u32 %s954_s15, 4  ;;  %s45_s16 = int_to_ptr.vmem [resolvable:$true] %s44_s16 }
  0x1a   :  { %s850_s17 = scalar_lea.vmem %s45_s16, 5120  ;;  %p855_p11 = scmp.lt.s32.totalorder %s45_s16, %s45_s16 }
  0x1b   :  { %p851_p10 = scmp.ne.s32.totalorder %s45_s16, %s850_s17  ;;  %p856_p12 = scmp.lt.s32.totalorder %s850_s17, %s850_s17 }
  0x1d   :  { %p857_p13 = por %p856_p12, %p855_p11 }
  0x1f   :  { %p858_p0 = pnand %p857_p13, %p851_p10 }
  0x21   :  { %861 = shalt.err (!%p858_p0)
}
  0x22   :  { %s955_s1 = smov 256   ;;  %s956_s18 = smov 16  }
  0x23   :  { %50 = dma.hbm_to_vmem [thread:$0]  %s1039_s2, 5120, %s45_s16, [#allocation7], %s955_s1, %s955_s1, %s956_s18  }
  0x24   :  { %s957_s21 = smov [#allocation9]  }
  0x25   :  { %s58_s22 = sshll.u32 %s957_s21, 4  ;;  %s59_s22 = int_to_ptr.vmem [resolvable:$true] %s58_s22 }
  0x26   :  { %s870_s0 = scalar_lea.vmem %s59_s22, 1024  ;;  %p875_p2 = scmp.lt.s32.totalorder %s59_s22, %s59_s22 }
  0x27   :  { %p871_p1 = scmp.ne.s32.totalorder %s59_s22, %s870_s0  ;;  %p876_p3 = scmp.lt.s32.totalorder %s870_s0, %s870_s0 }
  0x29   :  { %p877_p4 = por %p876_p3, %p875_p2 }
  0x2b   :  { %p878_p5 = pnand %p877_p4, %p871_p1 }
  0x2d   :  { %881 = shalt.err (!%p878_p5)
}
  0x2e   :  { %s958_s23 = smov 64   ;;  %s959_s24 = smov 4  }
  0x2f   :  { %64 = dma.hbm_to_vmem [thread:$0]  %s1041_s4, 1024, %s59_s22, [#allocation10], %s958_s23, %s958_s23, %s959_s24  }
  0x30   :  { %942 = dma.done.wait [#allocation4], 256  }
  0x31   :  { %943 = vsyncadd [#allocation4], 4294967040 }
  0x32   :  { %944 = dma.done.wait [#allocation7], 5248  }
  0x33   :  { %945 = vsyncadd [#allocation7], 4294962048 }
  0x34   :  { %946 = dma.done.wait [#allocation10], 1024  }
  0x35   :  { %947 = vsyncadd [#allocation10], 4294966272  ;;  %v718_v0 = vld [vmem:[#allocation8 + $0xe4] ss:$16 sps:$4 sm:$0xff]   ;;  %v720_v1 = vld [vmem:[#allocation8 + $0xe0] ss:$16 sps:$4 sm:$0xff]   ;;  %v130_v53 = vlaneseq }
  0x36   :  { %354 = vmatprep.subr.bf16.mxu0 %v718_v0  ;;  %v721_v2 = vld [vmem:[#allocation8 + $0xc4] ss:$16 sps:$4 sm:$0xff]   ;;  %v723_v3 = vld [vmem:[#allocation8 + $0xc0] ss:$16 sps:$4 sm:$0xff]   ;;  %v729_v5 = vld [vmem:[#allocation8 + $0xec] ss:$16 sps:$4 sm:$0xff]  }
  0x37   :  { %355 = vmatpush1.bf16.msra.mxu0 %v720_v1  ;;  %v724_v4 = vld [vmem:[#allocation8 + $0xa4] ss:$16 sps:$4 sm:$0xff]   ;;  %v732_v6 = vld [vmem:[#allocation8 + $0xe8] ss:$16 sps:$4 sm:$0xff]   ;;  %v726_v7 = vld [vmem:[#allocation8 + $0xa0] ss:$16 sps:$4 sm:$0xff]   ;;  %395 = vmatprep.subr.bf16.mxu1 %v729_v5 }
  0x38   :  { %356 = vmatprep.subr.bf16.mxu0 %v721_v2  ;;  %v727_v8 = vld [vmem:[#allocation8 + $0x84] ss:$16 sps:$4 sm:$0xff]   ;;  %396 = vmatpush1.bf16.msra.mxu1 %v732_v6  ;;  %v735_v9 = vld [vmem:[#allocation8 + $0xcc] ss:$16 sps:$4 sm:$0xff]   ;;  %v738_v10 = vld [vmem:[#allocation8 + $0xc8] ss:$16 sps:$4 sm:$0xff]  }
  0x39   :  { %397 = vmatprep.subr.bf16.mxu1 %v735_v9  ;;  %v731_v11 = vld [vmem:[#allocation8 + $0x80] ss:$16 sps:$4 sm:$0xff]   ;;  %v733_v12 = vld [vmem:[#allocation8 + $0x64] ss:$16 sps:$4 sm:$0xff]   ;;  %v741_v13 = vld [vmem:[#allocation8 + $0xac] ss:$16 sps:$4 sm:$0xff]  }
  0x3a   :  { %v744_v14 = vld [vmem:[#allocation8 + $0xa8] ss:$16 sps:$4 sm:$0xff]   ;;  %v747_v15 = vld [vmem:[#allocation8 + $0x8c] ss:$16 sps:$4 sm:$0xff]   ;;  %v737_v16 = vld [vmem:[#allocation8 + $0x60] ss:$16 sps:$4 sm:$0xff]  }
  0x3b   :  { %357 = vmatpush1.bf16.msra.mxu0 %v723_v3  ;;  %v739_v17 = vld [vmem:[#allocation8 + $0x44] ss:$16 sps:$4 sm:$0xff]   ;;  %v750_v18 = vld [vmem:[#allocation8 + $0x88] ss:$16 sps:$4 sm:$0xff]   ;;  %v753_v19 = vld [vmem:[#allocation8 + $0x6c] ss:$16 sps:$4 sm:$0xff]  }
  0x3c   :  { %358 = vmatprep.subr.bf16.mxu0 %v724_v4  ;;  %398 = vmatpush1.bf16.msra.mxu1 %v738_v10  ;;  %v743_v20 = vld [vmem:[#allocation8 + $0x40] ss:$16 sps:$4 sm:$0xff]   ;;  %v745_v21 = vld [vmem:[#allocation8 + $0x24] ss:$16 sps:$4 sm:$0xff]   ;;  %v756_v22 = vld [vmem:[#allocation8 + $0x68] ss:$16 sps:$4 sm:$0xff]  }
  0x3d   :  { %399 = vmatprep.subr.bf16.mxu1 %v741_v13  ;;  %v759_v23 = vld [vmem:[#allocation8 + $0x4c] ss:$16 sps:$4 sm:$0xff]   ;;  %v85_v24 = vld [vmem:[#allocation3 + $0x8] sm:$0xff]  ;;  %vm350_vm0 = vcmask 261120   ;;  %v762_v28 = vld [vmem:[#allocation8 + $0x48] ss:$16 sps:$4 sm:$0xff]  }
  0x3e   :  { %v749_v25 = vld [vmem:[#allocation8 + $0x20] ss:$16 sps:$4 sm:$0xff]   ;;  %v87_v26 = vpack.c.bf16 %v85_v24, %v85_v24  ;;  %v751_v27 = vld [vmem:[#allocation8 + $0x4] ss:$16 sps:$4 sm:$0xff]   ;;  %v765_v30 = vld [vmem:[#allocation8 + $0x2c] ss:$16 sps:$4 sm:$0xff]  }
  0x3f   :  { %359 = vmatpush1.bf16.msra.mxu0 %v726_v7  ;;  %v755_v29 = vld [vmem:[#allocation8] ss:$16 sps:$4 sm:$0xff]   ;;  %v757_v31 = vld [vmem:[#allocation8 + $0x124] ss:$16 sps:$4 sm:$0xff]   ;;  %v768_v32 = vld [vmem:[#allocation8 + $0x28] ss:$16 sps:$4 sm:$0xff]  }
  0x40   :  { %360 = vmatprep.subr.bf16.mxu0 %v727_v8  ;;  %400 = vmatpush1.bf16.msra.mxu1 %v744_v14  ;;  %v769_v33 = vld [vmem:[#allocation8 + $0xc] ss:$16 sps:$4 sm:$0xff]   ;;  %v761_v34 = vld [vmem:[#allocation8 + $0x120] ss:$16 sps:$4 sm:$0xff]   ;;  %v763_v35 = vld [vmem:[#allocation8 + $0x104] ss:$16 sps:$4 sm:$0xff]  }
  0x41   :  { %401 = vmatprep.subr.bf16.mxu1 %v747_v15  ;;  %662 = vmatprep.mubr.msk.bf16.mxu0 %vm350_vm0, %v87_v26  ;;  %v771_v36 = vld [vmem:[#allocation8 + $0x8] ss:$16 sps:$4 sm:$0xff]   ;;  %v772_v37 = vld [vmem:[#allocation8 + $0x12c] ss:$16 sps:$4 sm:$0xff]   ;;  %v767_v38 = vld [vmem:[#allocation8 + $0x100] ss:$16 sps:$4 sm:$0xff]  }
  0x42   :  { %663 = vmatprep.mubr.msk.bf16.mxu1 %vm350_vm0, %v87_v26  ;;  %v84_v39 = vld [vmem:[#allocation3] sm:$0xff]  ;;  %v778_v44 = vld [vmem:[#allocation9 + $0x38] sm:$0xff]   ;;  %v960_v45 = vmov 0.0   ;;  %v779_v46 = vld [vmem:[#allocation9 + $0x30] sm:$0xff]   ;;  %vm961_vm1 = vmmov 0   ;;  %v131_v54 = vshrl.u32 %v130_v53, 7 }
  0x43   :  { %361 = vmatpush1.bf16.msra.mxu0 %v731_v11  ;;  %v774_v40 = vld [vmem:[#allocation8 + $0x128] ss:$16 sps:$4 sm:$0xff]   ;;  %v775_v41 = vld [vmem:[#allocation8 + $0x10c] ss:$16 sps:$4 sm:$0xff]   ;;  %v86_v42 = vpack.c.bf16 %v84_v39, %v84_v39  ;;  %v781_v48 = vld [vmem:[#allocation9 + $0x20] sm:$0xff]  }
  0x44   :  { %362 = vmatprep.subr.bf16.mxu0 %v733_v12  ;;  %402 = vmatpush1.bf16.msra.mxu1 %v750_v18  ;;  %v777_v43 = vld [vmem:[#allocation8 + $0x108] ss:$16 sps:$4 sm:$0xff]   ;;  %v783_v50 = vld [vmem:[#allocation9 + $0x10] sm:$0xff]   ;;  %v785_v52 = vld [vmem:[#allocation9] sm:$0xff]   ;;  %v132_v55 = vsub.s32 0, %v131_v54  ;;  %v136_v57 = vsub.s32 1, %v131_v54 }
  0x45   :  { %403 = vmatprep.subr.bf16.mxu1 %v753_v19  ;;  %v780_v47 = vld [vmem:[#allocation9 + $0x28] sm:$0xff]   ;;  %v782_v49 = vld [vmem:[#allocation9 + $0x18] sm:$0xff]   ;;  %v128_v56 = vld [vmem:[%s1040_s3] sm:$0xf]  ;;  %v144_v2 = vsub.s32 3, %v131_v54  ;;  %v140_v6 = vsub.s32 2, %v131_v54 }
  0x46   :  { %v784_v51 = vld [vmem:[#allocation9 + $0x8] sm:$0xff]   ;;  %v133_v58 = vrot.slane %v128_v56, %v132_v55  ;;  %v137_v59 = vrot.slane %v128_v56, %v136_v57  ;;  %s962_s3 = smov [#allocation12]  }
  0x47   :  { %363 = vmatpush1.bf16.msra.mxu0 %v737_v16  ;;  %v145_v8 = vrot.slane %v128_v56, %v144_v2  ;;  %v141_v10 = vrot.slane %v128_v56, %v140_v6  ;;  %s594_s27 = sshll.u32 %s962_s3, 4  ;;  %s595_s27 = int_to_ptr.vmem [resolvable:$true] %s594_s27 }
  0x48   :  { %364 = vmatprep.subr.bf16.mxu0 %v739_v17  ;;  %404 = vmatpush1.bf16.msra.mxu1 %v756_v22  ;;  %v455_v22 = vld [vmem:[#allocation6] sm:$0xff]  ;;  %s882_s28 = scalar_lea.vmem %s595_s27, 128  ;;  %p887_p7 = scmp.lt.s32.totalorder %s595_s27, %s595_s27 }
  0x49   :  { %405 = vmatprep.subr.bf16.mxu1 %v759_v23  ;;  %p883_p6 = scmp.ne.s32.totalorder %s595_s27, %s882_s28  ;;  %p888_p8 = scmp.lt.s32.totalorder %s882_s28, %s882_s28 }
  0x4b   :  { %365 = vmatpush1.bf16.msra.mxu0 %v743_v20  ;;  %p889_p9 = por %p888_p8, %p887_p7 }
  0x4c   :  { %366 = vmatprep.subr.bf16.mxu0 %v745_v21  ;;  %406 = vmatpush1.bf16.msra.mxu1 %v762_v28 }
  0x4d   :  { %407 = vmatprep.subr.bf16.mxu1 %v765_v30  ;;  %p890_p10 = pnand %p889_p9, %p883_p6 }
  0x4f   :  { %367 = vmatpush1.bf16.msra.mxu0 %v749_v25 }
  0x50   :  { %368 = vmatprep.subr.bf16.mxu0 %v751_v27  ;;  %408 = vmatpush1.bf16.msra.mxu1 %v768_v32 }
  0x51   :  { %409 = vmatprep.subr.bf16.mxu1 %v769_v33 }
  0x53   :  { %369 = vmatpush1.bf16.msra.mxu0 %v755_v29 }
  0x54   :  { %382 = vmatprep.subr.bf16.mxu0 %v757_v31  ;;  %410 = vmatpush1.bf16.msra.mxu1 %v771_v36 }
  0x55   :  { %423 = vmatprep.subr.bf16.mxu1 %v772_v37 }
  0x57   :  { %383 = vmatpush2.bf16.msra.mxu0 %v761_v34 }
  0x58   :  { %384 = vmatprep.subr.bf16.mxu0 %v763_v35  ;;  %424 = vmatpush2.bf16.msra.mxu1 %v774_v40 }
  0x59   :  { %425 = vmatprep.subr.bf16.mxu1 %v775_v41 }
  0x5b   :  { %385 = vmatpush2.bf16.msra.mxu0 %v767_v38 }
  0x5c   :  { %426 = vmatpush2.bf16.msra.mxu1 %v777_v43  ;;  %685 = vmatprep.subr.bf16.mxu0 %v960_v45 }
  0x5e   :  { %387 = vmatmul.mubr.bf16.vlgmr.msra.gmra.mxu0 %v86_v42 }
  0x5f   :  { %428 = vmatmul.mubr.bf16.vlgmr.msra.gmra.mxu1 %v86_v42  ;;  %686 = vmatpush3.bf16.msra.mxu0 %v778_v44 }
  0x60   :  { %687 = vmatprep.subr.bf16.mxu0 %v960_v45  ;;  %701 = vmatprep.mubr.msk.bf16.mxu0 %vm961_vm1, %v960_v45 }
  0x63   :  { %688 = vmatpush3.bf16.msra.mxu0 %v779_v46 }
  0x64   :  { %689 = vmatprep.subr.bf16.mxu0 %v960_v45 }
  0x67   :  { %690 = vmatpush3.bf16.msra.mxu0 %v780_v47 }
  0x68   :  { %691 = vmatprep.subr.bf16.mxu0 %v960_v45 }
  0x6b   :  { %692 = vmatpush3.bf16.msra.mxu0 %v781_v48 }
  0x6c   :  { %693 = vmatprep.subr.bf16.mxu0 %v960_v45 }
  0x6f   :  { %694 = vmatpush3.bf16.msra.mxu0 %v782_v49 }
  0x70   :  { %695 = vmatprep.subr.bf16.mxu0 %v960_v45 }
  0x73   :  { %696 = vmatpush3.bf16.msra.mxu0 %v783_v50 }
  0x74   :  { %697 = vmatprep.subr.bf16.mxu0 %v960_v45 }
  0x77   :  { %698 = vmatpush3.bf16.msra.mxu0 %v784_v51 }
  0x78   :  { %699 = vmatprep.subr.bf16.mxu0 %v960_v45 }
  0x7b   :  { %700 = vmatpush3.bf16.msra.mxu0 %v785_v52 }
 0x11e   :  { %v388_v60 = vpop.f32.mrf.mxu0 }
 0x11f   :  { %v389_v61 = vadd.f32 %v388_v60, %v133_v58  ;;  %v429_v4 = vpop.f32.mrf.mxu1 }
 0x120   :  { %v390_v62 = vpop.f32.mrf.mxu0  ;;  %v430_v13 = vadd.f32 %v429_v4, %v141_v10 }
 0x121   :  { %v664_v63 = vmul.f32 -1.442695, %v389_v61  ;;  %v391_v0 = vadd.f32 %v390_v62, %v137_v59  ;;  %v431_v7 = vpop.f32.mrf.mxu1 }
 0x122   :  { %v392_v1 = vpop.f32.mrf.mxu0  ;;  %v432_v12 = vadd.f32 %v431_v7, %v145_v8 }
 0x123   :  { %786 = vpow2.f32 %v664_v63  ;;  %v665_v3 = vmul.f32 -1.442695, %v391_v0  ;;  %v433_v9 = vpop.f32.mrf.mxu1 }
 0x124   :  { %v393_v5 = vpop.f32.mrf.mxu0  ;;  %v666_v14 = vmul.f32 -1.442695, %v432_v12 }
 0x125   :  { %788 = vpow2.f32 %v665_v3  ;;  %v434_v11 = vpop.f32.mrf.mxu1 }
 0x126   :  { %790 = vtanh.f32 %v430_v13 }
 0x127   :  { %792 = vpow2.f32 %v666_v14 }
 0x130   :  { %v787_v15 = vpop.eup %786 }
 0x131   :  { %v439_v16 = vadd.f32 1.0, %v787_v15 }
 0x132   :  { %v789_v17 = vpop.eup %788 }
 0x133   :  { %794 = vrcp.f32 %v439_v16  ;;  %v445_v18 = vadd.f32 1.0, %v789_v17  ;;  %v791_v19 = vpop.eup %790 }
 0x134   :  { %v793_v20 = vpop.eup %792 }
 0x135   :  { %796 = vrcp.f32 %v445_v18  ;;  %v452_v24 = vadd.f32 1.0, %v793_v20 }
 0x137   :  { %798 = vrcp.f32 %v452_v24 }
 0x140   :  { %v795_v21 = vpop.eup %794 }
 0x141   :  { %v457_v26 = vmul.f32 %v795_v21, %v791_v19 }
 0x142   :  { %v797_v23 = vpop.eup %796 }
 0x143   :  { %v456_v25 = vmul.f32 %v797_v23, %v455_v22 }
 0x144   :  { %v799_v28 = vpop.eup %798 }
 0x145   :  { %v458_v27 = vadd.f32 %v457_v26, %v456_v25 }
 0x147   :  { %800 = vtanh.f32 %v458_v27  ;;  %462 = vst [vmem:[#allocation14] sm:$0xff] %v458_v27 }
 0x154   :  { %v801_v29 = vpop.eup %800 }
 0x155   :  { %v460_v30 = vmul.f32 %v801_v29, %v799_v28 }
 0x157   :  { %v463_v31 = vpack.c.bf16 %v460_v30, %v460_v30  ;;  %461 = vst [vmem:[#allocation12] sm:$0xff] %v460_v30 }
 0x159   :  { %464 = vst [vmem:[#allocation2] sm:$0xf] %v463_v31 }
 0x160   :  { %v465_v32 = vld [vmem:[#allocation2] sm:$0xf] }
 0x161   :  { %702 = vmatmul.mubr.bf16.vlgmr.msra.gmra.mxu0 %v465_v32 }
 0x162   :  { %893 = shalt.err (!%p890_p10)
}
 0x163   :  { %597 = dma.vmem_to_hbm [thread:$0]  %s595_s27, 128, %s1044_s7, [#allocation13]  }
 0x164   :  { %s963_s9 = smov [#allocation14]  }
 0x165   :  { %s604_s10 = sshll.u32 %s963_s9, 4  ;;  %s605_s10 = int_to_ptr.vmem [resolvable:$true] %s604_s10 }
 0x166   :  { %s902_s11 = scalar_lea.vmem %s605_s10, 128  ;;  %p907_p12 = scmp.lt.s32.totalorder %s605_s10, %s605_s10 }
 0x167   :  { %p903_p11 = scmp.ne.s32.totalorder %s605_s10, %s902_s11  ;;  %p908_p13 = scmp.lt.s32.totalorder %s902_s11, %s902_s11 }
 0x169   :  { %p909_p0 = por %p908_p13, %p907_p12 }
 0x16b   :  { %p910_p1 = pnand %p909_p0, %p903_p11 }
 0x16d   :  { %913 = shalt.err (!%p910_p1)
}
 0x16e   :  { %607 = dma.vmem_to_hbm [thread:$0]  %s605_s10, 128, %s1045_s8, [#allocation13]   ;;  %v667_v33 = vld [vmem:[%s1042_s5] ss:$0 sm:$0xff] }
 0x16f   :  { %s964_s16 = smov [#allocation11]  }
 0x170   :  { %s584_s7 = sshll.u32 %s964_s16, 4  ;;  %s585_s7 = int_to_ptr.vmem [resolvable:$true] %s584_s7 }
 0x171   :  { %s922_s17 = scalar_lea.vmem %s585_s7, 128  ;;  %p927_p3 = scmp.lt.s32.totalorder %s585_s7, %s585_s7 }
 0x172   :  { %p923_p2 = scmp.ne.s32.totalorder %s585_s7, %s922_s17  ;;  %p928_p4 = scmp.lt.s32.totalorder %s922_s17, %s922_s17 }
 0x174   :  { %p929_p5 = por %p928_p4, %p927_p3 }
 0x176   :  { %p930_p6 = pnand %p929_p5, %p923_p2 }
 0x221   :  { %v571_v34 = vpop.f32.mrf.mxu0 }
 0x222   :  { %v572_v35 = vadd.f32 %v667_v33, %v571_v34 }
 0x223   :  { %v703_v36 = vpop.f32.mrf.mxu0 }
 0x224   :  { %577 = vst [vmem:[#allocation11] sm:$0xff] %v572_v35 }
 0x225   :  { %v574_v37 = vpop.f32.mrf.mxu0 }
 0x226   :  { %933 = shalt.err (!%p930_p6)
}
 0x227   :  { %587 = dma.vmem_to_hbm [thread:$0]  %s585_s7, 128, %s1043_s6, [#allocation5]   ;;  %v704_v38 = vpop.f32.mrf.mxu0 }
 0x228   :  { %948 = dma.done.wait [#allocation5], 128  }
 0x229   :  { %949 = vsyncadd [#allocation5], 4294967168 }
 0x22a   :  { %950 = dma.done.wait [#allocation13], 256  }
 0x22b   :  { %951 = vsyncadd [#allocation13], 4294967040 }
 0x22c   :  { %617 = vsyncpa [#allocation4], 1 }
 0x22d   :  { %618 = vsyncpa [#allocation7], 1 }
 0x22e   :  { %619 = vsyncpa [#allocation10], 1 }
 0x22f   :  { %620 = vsyncpa [#allocation5], 1 }
 0x230   :  { %621 = vsyncpa [#allocation13], 1 }

</bundles_post_ra>
